<compile_context>
chip_gen: v5e
topology: v5e:2x2
jax: 0.10.0
libtpu: 0.0.40
codegen_flags: <defaults>
</compile_context>

<pallas_src>
import functools
import math
import re

import jax
import jax.numpy as jnp
from jax.experimental import pallas as pl
from jax.experimental.pallas import tpu as pltpu

_MiB = 1024 * 1024


# --------------------------------------------------------------------------- #
# Kernel
# --------------------------------------------------------------------------- #
def _mean_dim1_kernel(x_ref, o_ref, acc_ref, *, seq_len, seq_tile, scale, masked):
    """grid = (B_tiles, H_tiles, S_tiles); x_ref: (TB, TS, TH); o/acc: (TB, TH)."""
    s_idx = pl.program_id(2)
    s_last = pl.num_programs(2) - 1

    @pl.when(s_idx == 0)
    def _init():
        acc_ref[...] = jnp.zeros_like(acc_ref)

    # NOTE: the cast+sum may materialize an f32 copy of the block; the wrapper
    # budgets VMEM for exactly one such temp (see _pick_seq_tile).
    if masked:
        # Fast (unmasked) path for every full tile; only the final, possibly
        # padded tile pays the iota/compare/select, built from a (1, TS, 1) iota.
        @pl.when(s_idx < s_last)
        def _full_tile():
            acc_ref[...] += jnp.sum(x_ref[...].astype(jnp.float32), axis=1)

        @pl.when(s_idx == s_last)
        def _tail_tile():
            x = x_ref[...].astype(jnp.float32)
            row = jax.lax.broadcasted_iota(jnp.int32, (1, seq_tile, 1), 1)
            keep = (s_idx * seq_tile + row) < seq_len
            acc_ref[...] += jnp.sum(jnp.where(keep, x, 0.0), axis=1)
    else:
        acc_ref[...] += jnp.sum(x_ref[...].astype(jnp.float32), axis=1)

    @pl.when(s_idx == s_last)
    def _finalize():
        o_ref[...] = (acc_ref[...] * scale).astype(o_ref.dtype)


# --------------------------------------------------------------------------- #
# Tile / budget selection
# --------------------------------------------------------------------------- #
def _tpu_generation():
    try:
        kind = jax.devices()[0].device_kind.lower()
    except Exception:
        return 0
    m = re.search(r"v(\d+)", kind)
    return int(m.group(1)) if m else 0


def _gen_knobs(gen):
    """(target bytes per streamed input block, VMEM limit ceiling)."""
    if gen >= 7:   # 64 MiB VMEM, ~3.2 TB/s: big blocks, but leave headroom.
        return 16 * _MiB, 48 * _MiB
    if gen == 6:   # 128 MiB VMEM, ~1.4 TB/s.
        return 12 * _MiB, 96 * _MiB
    if gen == 5:   # 128 MiB VMEM, ~0.8 TB/s: 4 MiB already ~roofline.
        return 4 * _MiB, 96 * _MiB
    return 4 * _MiB, 32 * _MiB  # unknown / older: conservative.


def _round_up(x, m):
    return ((x + m - 1) // m) * m


def _pick_batch_tile(b, cap=8):
    """Full B, or a multiple of 8 dividing B (keeps the (TB, TH) out block legal)."""
    if b <= cap:
        return b
    for tb in range(cap - cap % 8 if cap >= 8 else cap, 0, -8):
        if b % tb == 0:
            return tb
    return b


def _pick_hidden_tile(hk, b_tiles, gen):
    """v7x megacore: split H into >=2 'parallel' tiles when B yields only one."""
    if gen < 7 or b_tiles >= 2 or hk < 256 or hk % 128 != 0:
        return hk
    for nt in (2, 4, 8, 16):
        if hk % nt == 0 and (hk // nt) % 128 == 0:
            return hk // nt
    return hk


def _pick_seq_tile(sk, tb, th, itemsize, sub, n_buf, target_block_bytes, vmem_cap):
    """Largest seq tile whose *lane/sublane-padded* footprint fits the per-block
    target and whose full pipeline (n_buf input buffers + one f32 upcast temp +
    double-buffered out + accumulator + slack) fits the VMEM ceiling."""
    th_pad = _round_up(th, 128)
    row_bytes = tb * th_pad * itemsize                     # one padded seq row
    fixed = 3 * tb * th_pad * 4 + 4 * _MiB                 # out(x2) + acc + slack
    per_row_total = tb * th_pad * (n_buf * itemsize + 4)   # buffers + f32 temp
    cap_rows = min(target_block_bytes // max(1, row_bytes),
                   max(0, vmem_cap - fixed) // max(1, per_row_total))
    if sk <= cap_rows:
        return sk
    return max(sub, (cap_rows // sub) * sub)


# --------------------------------------------------------------------------- #
# Wrapper
# --------------------------------------------------------------------------- #
def aggregator_forward(batch, attention_mask=None, output_attentions=False, *,
                       batch_tile=None, seq_tile=None, fold_lanes=True,
                       input_buffers=2, target_block_bytes=None,
                       vmem_cap_bytes=None):
    """Equivalent of Agregator.forward: mean over dim=1.  [B, S, H] -> [B, H]."""
    del attention_mask, output_attentions  # unused by the reference module
    if batch.ndim != 3:
        raise ValueError(f"expected [B, S, H], got {batch.shape}")
    B, S, H = batch.shape
    out_dtype = batch.dtype
    itemsize = jnp.dtype(batch.dtype).itemsize
    sub = {4: 8, 2: 16, 1: 32}.get(itemsize, 8)   # sublane multiple for dtype

    gen = _tpu_generation()
    d_target, d_cap = _gen_knobs(gen)
    target_block_bytes = d_target if target_block_bytes is None else target_block_bytes
    vmem_cap_bytes = d_cap if vmem_cap_bytes is None else vmem_cap_bytes

    # Lane folding: small / non-128-multiple H wastes 128-wide lanes and forces
    # masked stores.  View (B, S, H) as (B, S/g, g*H) (free row-major reshape),
    # reduce over the folded seq axis in-kernel, sum g segments in the epilogue.
    g = 1
    if fold_lanes and seq_tile is None and H % 128 != 0:
        cand = (H * 128) // math.gcd(H, 128) // H
        if cand <= 16 and S % cand == 0:
            g = cand
    x = batch if g == 1 else batch.reshape(B, S // g, g * H)
    Sk, Hk = x.shape[1], x.shape[2]

    # ---- tile selection ----------------------------------------------------
    if batch_tile is None:
        tb = _pick_batch_tile(B)
    else:
        tb = batch_tile
        if not (tb == B or (tb % 8 == 0 and B % tb == 0)):
            raise ValueError("batch_tile must equal B or be a multiple of 8 dividing B")
    b_tiles = max(1, B // tb)

    th = _pick_hidden_tile(Hk, b_tiles, gen)
    h_tiles = Hk // th

    n_buf = max(2, int(input_buffers))
    if seq_tile is None:
        ts = _pick_seq_tile(Sk, tb, th, itemsize, sub, n_buf,
                            target_block_bytes, vmem_cap_bytes)
    else:
        ts = seq_tile
        if not (ts == Sk or ts % 8 == 0):
            raise ValueError("seq_tile must equal the sequence length or be a multiple of 8")
    s_tiles = pl.cdiv(Sk, ts)
    masked = (Sk % ts) != 0

    # ---- computed VMEM limit (padded bytes), clamped per generation ---------
    th_pad = _round_up(th, 128)
    ts_pad = _round_up(ts, sub)
    in_block = tb * ts_pad * th_pad * itemsize
    f32_temp = tb * ts_pad * th_pad * 4       # possible materialized upcast
    out_block = tb * th_pad * 4               # f32 out tile (double-buffered)
    vmem_need = n_buf * in_block + f32_temp + 2 * out_block + out_block + 4 * _MiB
    vmem_limit = int(min(vmem_cap_bytes,
                         max(vmem_need, min(32 * _MiB, vmem_cap_bytes))))

    # ---- specs ---------------------------------------------------------------
    idx_in = lambda b, h, s: (b, s, h)
    in_spec = pl.BlockSpec((tb, ts, th), idx_in)
    if n_buf > 2 and hasattr(pl, "Buffered"):
        try:  # deeper input pipelining (sweepable; costs one extra block of VMEM)
            in_spec = pl.BlockSpec((tb, ts, th), idx_in,
                                   pipeline_mode=pl.Buffered(n_buf))
        except TypeError:
            in_spec = pl.BlockSpec((tb, ts, th), idx_in)

    cost = pl.CostEstimate(
        flops=B * S * H,
        transcendentals=0,
        bytes_accessed=B * S * H * itemsize + B * Hk * 4,
    )

    kernel = functools.partial(_mean_dim1_kernel, seq_len=Sk, seq_tile=ts,
                               scale=1.0 / S, masked=masked)

    out = pl.pallas_call(
        kernel,
        out_shape=jax.ShapeDtypeStruct((B, Hk), jnp.float32),
        grid=(b_tiles, h_tiles, s_tiles),
        in_specs=[in_spec],
        # Output block index ignores the S axis -> accumulator pattern: the
        # (TB, TH) tile stays resident across the reduction and is stored once.
        out_specs=pl.BlockSpec((tb, th), lambda b, h, s: (b, h)),
        scratch_shapes=[pltpu.VMEM((tb, th), jnp.float32)],
        compiler_params=pltpu.CompilerParams(
            dimension_semantics=("parallel", "parallel", "arbitrary"),
            vmem_limit_bytes=vmem_limit,
        ),
        cost_estimate=cost,
    )(x)

    if g > 1:
        # Tiny epilogue: sum the g lane segments (B*g*H elements, negligible).
        out = out.reshape(B, g, H).sum(axis=1)
    return out.astype(out_dtype)


# --------------------------------------------------------------------------- #
# Tests
# --------------------------------------------------------------------------- #
if __name__ == "__main__":
    # --- Test 1: the module's toy shape, default (auto) tiling + lane folding.
    B, S, H = 2, 8, 32
    batch = jax.random.normal(jax.random.PRNGKey(0), (B, S, H), dtype=jnp.float32)
    out = jax.block_until_ready(aggregator_forward(batch))
    ref = jnp.mean(batch, axis=1)
    assert out.shape == (B, H) and out.dtype == batch.dtype
    assert jnp.allclose(out, ref, atol=1e-5, rtol=1e-5)

    # --- Test 2: forced multi-step reduction with a ragged (masked) final S
    # tile (20 rows = two full 8-row tiles + one masked 4-row tail); explicit
    # seq_tile also exercises the unfolded small-H path.
    B2, S2, H2 = 4, 20, 32
    batch2 = jax.random.normal(jax.random.PRNGKey(1), (B2, S2, H2), dtype=jnp.float32)
    out2 = jax.block_until_ready(aggregator_forward(batch2, seq_tile=8))
    ref2 = jnp.mean(batch2, axis=1)
    assert out2.shape == (B2, H2)
    assert jnp.allclose(out2, ref2, atol=1e-5, rtol=1e-5)

    # --- Test 3: bf16 input (different sublane packing, f32 upcast-accumulate).
    B3, S3, H3 = 2, 16, 32
    batch3 = jax.random.normal(jax.random.PRNGKey(2), (B3, S3, H3),
                               dtype=jnp.float32).astype(jnp.bfloat16)
    out3 = jax.block_until_ready(aggregator_forward(batch3))
    ref3 = jnp.mean(batch3.astype(jnp.float32), axis=1)
    assert out3.shape == (B3, H3) and out3.dtype == jnp.bfloat16
    assert jnp.allclose(out3.astype(jnp.float32), ref3, atol=2e-2, rtol=2e-2)

    print("KERNEL_OK")
</pallas_src>

<mosaic_0001>
module attributes {stable_mosaic.version = 11 : i64} {
  func.func @_mean_dim1_kernel(%arg0: i32, %arg1: i32, %arg2: i32, %arg3: memref<2x2x128xf32, #tpu.memory_space<vmem>>, %arg4: memref<2x128xf32, #tpu.memory_space<vmem>>, %arg5: memref<2x128xf32, #tpu.memory_space<vmem>>) attributes {dimension_semantics = [#tpu.dimension_semantics<parallel>, #tpu.dimension_semantics<parallel>, #tpu.dimension_semantics<arbitrary>], iteration_bounds = array<i64: 1, 1, 1>, scalar_prefetch = 0 : i64, scratch_operands = 1 : i64, tpu.core_type = #tpu.core_type<tc>, window_params = [{transform_indices = @transform_0, window_bounds = array<i64: 2, 2, 128>}, {transform_indices = @transform_1, window_bounds = array<i64: 2, 128>}]} {
    %c0_i32 = arith.constant 0 : i32
    %0 = arith.cmpi eq, %arg2, %c0_i32 : i32
    %1 = arith.extui %0 : i1 to i32
    %c0_i32_0 = arith.constant 0 : i32
    %2 = arith.cmpi ne, %1, %c0_i32_0 : i32
    scf.if %2 {
      %cst_9 = arith.constant 0.000000e+00 : f32
      %11 = vector.broadcast %cst_9 : f32 to vector<2x128xf32>
      %c0_10 = arith.constant 0 : index
      %c0_11 = arith.constant 0 : index
      %12 = vector.load %arg5[%c0_10, %c0_11] : memref<2x128xf32, #tpu.memory_space<vmem>>, vector<2x128xf32>
      tpu.vector_store %arg5[%c0_10, %c0_11], %11 {strides = array<i32>} : memref<2x128xf32, #tpu.memory_space<vmem>>, vector<2x128xf32>,
    } else {
    }
    %c0 = arith.constant 0 : index
    %c0_1 = arith.constant 0 : index
    %3 = vector.load %arg5[%c0, %c0_1] : memref<2x128xf32, #tpu.memory_space<vmem>>, vector<2x128xf32>
    %c0_2 = arith.constant 0 : index
    %c0_3 = arith.constant 0 : index
    %c0_4 = arith.constant 0 : index
    %4 = vector.load %arg3[%c0_2, %c0_3, %c0_4] : memref<2x2x128xf32, #tpu.memory_space<vmem>>, vector<2x2x128xf32>
    %cst = arith.constant dense<0.000000e+00> : vector<2x128xf32>
    %5 = vector.multi_reduction <add>, %4, %cst [1] : vector<2x2x128xf32> to vector<2x128xf32>
    %6 = arith.addf %3, %5 : vector<2x128xf32>
    %c0_5 = arith.constant 0 : index
    %c0_6 = arith.constant 0 : index
    %7 = vector.load %arg5[%c0_5, %c0_6] : memref<2x128xf32, #tpu.memory_space<vmem>>, vector<2x128xf32>
    tpu.vector_store %arg5[%c0_5, %c0_6], %6 {strides = array<i32>} : memref<2x128xf32, #tpu.memory_space<vmem>>, vector<2x128xf32>,
    %c0_i32_7 = arith.constant 0 : i32
    %8 = arith.cmpi eq, %arg2, %c0_i32_7 : i32
    %9 = arith.extui %8 : i1 to i32
    %c0_i32_8 = arith.constant 0 : i32
    %10 = arith.cmpi ne, %9, %c0_i32_8 : i32
    scf.if %10 {
      %c0_9 = arith.constant 0 : index
      %c0_10 = arith.constant 0 : index
      %11 = vector.load %arg5[%c0_9, %c0_10] : memref<2x128xf32, #tpu.memory_space<vmem>>, vector<2x128xf32>
      %cst_11 = arith.constant 1.250000e-01 : f32
      %12 = vector.broadcast %cst_11 : f32 to vector<2x128xf32>
      %13 = arith.mulf %11, %12 : vector<2x128xf32>
      %c0_12 = arith.constant 0 : index
      %c0_13 = arith.constant 0 : index
      %14 = vector.load %arg4[%c0_12, %c0_13] : memref<2x128xf32, #tpu.memory_space<vmem>>, vector<2x128xf32>
      tpu.vector_store %arg4[%c0_12, %c0_13], %13 {strides = array<i32>} : memref<2x128xf32, #tpu.memory_space<vmem>>, vector<2x128xf32>,
    } else {
    }
    return
  }
  func.func @transform_0(%arg0: i32, %arg1: i32, %arg2: i32) -> (i32, i32, i32) {
    %c0_i32 = arith.constant 0 : i32
    return %arg0, %arg2, %arg1 : i32, i32, i32
  }
  func.func @transform_1(%arg0: i32, %arg1: i32, %arg2: i32) -> (i32, i32) {
    %c0_i32 = arith.constant 0 : i32
    return %arg0, %arg1 : i32, i32
  }
}

</mosaic_0001>

<bundles_post_ra>
// kernel: tpu_custom_call.1
= control target key start
LH: loop header
LB: loop body
LE: loop exit
PB: predicated region body
PF: predicated region fallthrough
CT: control target
= control target key end

     0   :  { %6 = vsyncpa [#allocation4], 0  ;;  %s156_s0 = inlined_call_operand.hbm [shape: f32[2,2,128], index: 0, kind: input, shape index: {}]   ;;  %s157_s1 = inlined_call_operand.hbm [shape: f32[2,128], index: 1, kind: output, shape index: {}]  }
   0x1   :  { %7 = vsyncpa [#allocation5], 0  ;;  %s12_s8 = sshll.u32 %s156_s0, 4  ;;  %s135_s9 = smov [#allocation3]   ;;  %s13_s8 = int_to_ptr.hbm [resolvable:$true] %s12_s8 }
   0x2   :  { %s14_s10 = sshll.u32 %s135_s9, 4  ;;  %s136_s11 = smov 32   ;;  %s15_s10 = int_to_ptr.vmem [resolvable:$true] %s14_s10 }
   0x3   :  { %s137_s12 = smov 2  }
   0x4   :  { %20 = dma.hbm_to_vmem [thread:$0]  %s13_s8, 64, %s15_s10, [#allocation4], %s136_s11, %s136_s11, %s137_s12  }
   0x5   :  { %131 = dma.done.wait [#allocation4], 64  }
   0x6   :  { %132 = vsyncadd [#allocation4], 4294967232  ;;  %v138_v0 = vmov 0.0   ;;  %vm33_vm0 = vcmask 1041408   ;;  %v31_v1 = vld [vmem:[#allocation3] sm:$0x3] }
   0x7   :  { %29 = vst [vmem:[#allocation2] sm:$0x3] %v138_v0  ;;  %v32_v2 = vld [vmem:[#allocation3 + $0x2] sm:$0x3]  ;;  %v34_v3 = vsel %vm33_vm0, %v31_v1, 0.0  ;;  %vm50_vm1 = vcmask 1041409  }
   0x8   :  { %v41_v4 = vsel %vm33_vm0, %v32_v2, 0.0  ;;  %v35_v5 = vrot.slane %v34_v3, 4  ;;  %s139_s0 = smov [#allocation6]   ;;  %s68_s16 = sshll.u32 %s157_s1, 4  ;;  %s69_s16 = int_to_ptr.hbm [resolvable:$true] %s68_s16 }
   0x9   :  { %v42_v6 = vrot.slane %v41_v4, 4  ;;  %s66_s13 = sshll.u32 %s139_s0, 4  ;;  %s67_s13 = int_to_ptr.vmem [resolvable:$true] %s66_s13 }
   0xa   :  { %v36_v7 = vadd.f32 %v35_v5, %v34_v3 }
   0xb   :  { %v43_v8 = vadd.f32 %v42_v6, %v41_v4 }
   0xc   :  { %v37_v9 = vrot.slane %v36_v7, 2 }
   0xd   :  { %v44_v10 = vrot.slane %v43_v8, 2 }
   0xe   :  { %v38_v11 = vadd.f32 %v37_v9, %v36_v7  ;;  %v30_v15 = vld [vmem:[#allocation2] sm:$0x3] }
   0xf   :  { %v45_v12 = vadd.f32 %v44_v10, %v43_v8 }
  0x10   :  { %v39_v13 = vrot.slane %v38_v11, 1 }
  0x11   :  { %v46_v14 = vrot.slane %v45_v12, 1 }
  0x12   :  { %v40_v16 = vadd.f32 %v39_v13, %v38_v11 }
  0x13   :  { %v47_v17 = vadd.f32 %v46_v14, %v45_v12 }
  0x15   :  { %v51_v18 = vsel %vm50_vm1, %v47_v17, %v40_v16 }
  0x16   :  { %v53_v19 = vadd.f32 %v51_v18, %v30_v15 }
  0x18   :  { %54 = vst [vmem:[#allocation2] sm:$0x3] %v53_v19 }
  0x1f   :  { %v58_v20 = vld [vmem:[#allocation2] sm:$0x3] }
  0x20   :  { %v59_v21 = vmul.f32 0.125, %v58_v20 }
  0x22   :  { %60 = vst [vmem:[#allocation6] sm:$0x3] %v59_v21 }
  0x23   :  { %71 = dma.vmem_to_hbm [thread:$0]  %s67_s13, 32, %s69_s16, [#allocation5]  }
  0x24   :  { %133 = dma.done.wait [#allocation5], 32  }
  0x25   :  { %134 = vsyncadd [#allocation5], 4294967264 }
  0x26   :  { %76 = vsyncpa [#allocation4], 1 }
  0x27   :  { %77 = vsyncpa [#allocation5], 1 }

</bundles_post_ra>
